<compile_context>
chip_gen: v7x
topology: tpu7x:2x2x1
jax: 0.10.0
libtpu: 0.0.40
codegen_flags: <defaults>
</compile_context>

<pallas_src>
import jax
import jax.numpy as jnp
from jax.experimental import pallas as pl
from jax.experimental.pallas import tpu as pltpu

N_IN, N_HID, N_OUT = 5, 50, 1
N_IN_PAD, N_HID_PAD = 8, 56          # sublane-aligned (multiples of 8)
TB_MAX = 1024                        # batch tile (lanes); multiple of 128, tiny vs VMEM


def _round_up(x, m):
    return (x + m - 1) // m * m


def smallnet_kernel(x_ref, w1_ref, w2_ref, o_ref):
    # x_ref : [8, TB]   w1_ref : [56, 8]   w2_ref : [56, 1]   o_ref : [1, TB]
    x = x_ref[...]
    # fc1 (no bias) on the MXU: [56, 8] @ [8, TB] -> [56, TB]
    h = jnp.dot(w1_ref[...], x, preferred_element_type=jnp.float32)
    h = jnp.maximum(h, 0.0)                                   # relu (VPU)
    # fc2 output width is 1 -> skip the MXU: VPU multiply + sublane reduce (XLU)
    y = jnp.sum(h * w2_ref[...], axis=0, keepdims=True)       # [1, TB]
    o_ref[...] = jnp.tanh(y).astype(o_ref.dtype)              # tanh (EUP)


def prepare_params(w1, w2):
    """One-time weight prep (hoisted out of the per-call forward).

    w1: [50, 5] (PyTorch fc1.weight) -> padded [56, 8]
    w2: [1, 50] (PyTorch fc2.weight) -> padded column [56, 1]
    Zero padding keeps the math exact (padded rows/cols contribute nothing).
    """
    w1_p = jnp.zeros((N_HID_PAD, N_IN_PAD), jnp.float32).at[:N_HID, :N_IN].set(w1)
    w2_p = jnp.zeros((N_HID_PAD, 1), jnp.float32).at[:N_HID, 0].set(w2[0])
    return w1_p, w2_p


@jax.jit
def smallnet_forward(x, w1_p, w2_p):
    """x: [B, 5] f32;  w1_p/w2_p from prepare_params.  Returns [B, 1] f32."""
    B = x.shape[0]
    TB = min(TB_MAX, _round_up(max(B, 1), 128))
    B_pad = _round_up(B, TB)

    # Feature-major, lane-dense input: [8, B_pad], zero-padded.
    x_fm = jnp.zeros((N_IN_PAD, B_pad), jnp.float32).at[:N_IN, :B].set(x.T)

    cost = pl.CostEstimate(
        flops=2 * B * N_IN * N_HID + 2 * B * N_HID,
        transcendentals=B,
        bytes_accessed=B * (N_IN + N_OUT) * 4 + (N_HID * N_IN + N_HID) * 4,
    )

    out = pl.pallas_call(
        smallnet_kernel,
        out_shape=jax.ShapeDtypeStruct((1, B_pad), jnp.float32),
        grid_spec=pltpu.PrefetchScalarGridSpec(
            num_scalar_prefetch=0,
            grid=(B_pad // TB,),
            in_specs=[
                pl.BlockSpec((N_IN_PAD, TB), lambda i: (0, i)),         # x batch tile
                pl.BlockSpec((N_HID_PAD, N_IN_PAD), lambda i: (0, 0)),  # w1 resident
                pl.BlockSpec((N_HID_PAD, 1), lambda i: (0, 0)),         # w2 resident
            ],
            out_specs=pl.BlockSpec((1, TB), lambda i: (0, i)),          # lane-dense out
        ),
        compiler_params=pltpu.CompilerParams(
            dimension_semantics=("parallel",),  # shard batch tiles across TCs on v7x
        ),
        cost_estimate=cost,
    )(x_fm, w1_p, w2_p)

    return out[0, :B].reshape(B, 1)


def init_params(key):
    # torch.nn.Linear default init: U(-1/sqrt(fan_in), 1/sqrt(fan_in)), bias=False
    k1, k2 = jax.random.split(key)
    b1 = 1.0 / jnp.sqrt(N_IN)
    b2 = 1.0 / jnp.sqrt(N_HID)
    w1 = jax.random.uniform(k1, (N_HID, N_IN), jnp.float32, minval=-b1, maxval=b1)
    w2 = jax.random.uniform(k2, (N_OUT, N_HID), jnp.float32, minval=-b2, maxval=b2)
    return w1, w2


if __name__ == "__main__":
    key = jax.random.PRNGKey(0)
    kx, kp = jax.random.split(key)
    B = 8
    x = jax.random.normal(kx, (B, N_IN), dtype=jnp.float32)
    w1, w2 = init_params(kp)
    w1_p, w2_p = prepare_params(w1, w2)      # one-time layout prep (no per-call transposes)

    out = smallnet_forward(x, w1_p, w2_p)
    out = jax.block_until_ready(out)

    # Reference check in plain JAX (same math as the PyTorch forward).
    ref = jnp.tanh(jnp.maximum(x @ w1.T, 0.0) @ w2.T)
    assert out.shape == (B, 1)
    assert jnp.allclose(out, ref, atol=1e-5, rtol=1e-5)

    print("KERNEL_OK")
</pallas_src>

<mosaic_0001>
module attributes {stable_mosaic.version = 11 : i64} {
  func.func @smallnet_kernel(%arg0: i32, %arg1: memref<8x128xf32, #tpu.memory_space<vmem>>, %arg2: memref<56x8xf32, #tpu.memory_space<vmem>>, %arg3: memref<56x1xf32, #tpu.memory_space<vmem>>, %arg4: memref<1x128xf32, #tpu.memory_space<vmem>>) attributes {dimension_semantics = [#tpu.dimension_semantics<parallel>], iteration_bounds = array<i64: 1>, scalar_prefetch = 0 : i64, scratch_operands = 0 : i64, tpu.core_type = #tpu.core_type<tc>, window_params = [{transform_indices = @transform_0, window_bounds = array<i64: 8, 128>}, {pipeline_mode = #tpu.pipeline_mode<synchronous>, transform_indices = @transform_1, window_bounds = array<i64: 56, 8>}, {pipeline_mode = #tpu.pipeline_mode<synchronous>, transform_indices = @transform_2, window_bounds = array<i64: 56, 1>}, {transform_indices = @transform_3, window_bounds = array<i64: 1, 128>}]} {
    %c0 = arith.constant 0 : index
    %c0_0 = arith.constant 0 : index
    %0 = vector.load %arg1[%c0, %c0_0] : memref<8x128xf32, #tpu.memory_space<vmem>>, vector<8x128xf32>
    %c0_1 = arith.constant 0 : index
    %c0_2 = arith.constant 0 : index
    %1 = vector.load %arg2[%c0_1, %c0_2] : memref<56x8xf32, #tpu.memory_space<vmem>>, vector<56x8xf32>
    %cst = arith.constant dense<0.000000e+00> : vector<56x128xf32>
    %2 = tpu.matmul %1, %0, %cst {dimension_numbers = #tpu.dot_dimension_numbers<[1], [0], [0], [1], [0, 0, 1, 1], [], []>} : vector<56x8xf32>, vector<8x128xf32>, vector<56x128xf32> -> vector<56x128xf32>
    %cst_3 = arith.constant 0.000000e+00 : f32
    %3 = vector.broadcast %cst_3 : f32 to vector<56x128xf32>
    %4 = arith.maximumf %2, %3 : vector<56x128xf32>
    %c0_4 = arith.constant 0 : index
    %c0_5 = arith.constant 0 : index
    %5 = vector.load %arg3[%c0_4, %c0_5] : memref<56x1xf32, #tpu.memory_space<vmem>>, vector<56x1xf32>
    %6 = vector.broadcast %5 : vector<56x1xf32> to vector<56x128xf32>
    %7 = arith.mulf %4, %6 : vector<56x128xf32>
    %cst_6 = arith.constant dense<0.000000e+00> : vector<128xf32>
    %8 = vector.multi_reduction <add>, %7, %cst_6 [0] : vector<56x128xf32> to vector<128xf32>
    %9 = vector.shape_cast %8 : vector<128xf32> to vector<1x128xf32>
    %10 = math.tanh %9 : vector<1x128xf32>
    %c0_7 = arith.constant 0 : index
    %c0_8 = arith.constant 0 : index
    %11 = vector.load %arg4[%c0_7, %c0_8] : memref<1x128xf32, #tpu.memory_space<vmem>>, vector<1x128xf32>
    tpu.vector_store %arg4[%c0_7, %c0_8], %10 {strides = array<i32>} : memref<1x128xf32, #tpu.memory_space<vmem>>, vector<1x128xf32>,
    return
  }
  func.func @transform_0(%arg0: i32) -> (i32, i32) {
    %c0_i32 = arith.constant 0 : i32
    %c0_i32_0 = arith.constant 0 : i32
    return %c0_i32, %arg0 : i32, i32
  }
  func.func @transform_1(%arg0: i32) -> (i32, i32) {
    %c0_i32 = arith.constant 0 : i32
    %c0_i32_0 = arith.constant 0 : i32
    %c0_i32_1 = arith.constant 0 : i32
    return %c0_i32, %c0_i32_0 : i32, i32
  }
  func.func @transform_2(%arg0: i32) -> (i32, i32) {
    %c0_i32 = arith.constant 0 : i32
    %c0_i32_0 = arith.constant 0 : i32
    %c0_i32_1 = arith.constant 0 : i32
    return %c0_i32, %c0_i32_0 : i32, i32
  }
  func.func @transform_3(%arg0: i32) -> (i32, i32) {
    %c0_i32 = arith.constant 0 : i32
    %c0_i32_0 = arith.constant 0 : i32
    return %c0_i32, %arg0 : i32, i32
  }
}

</mosaic_0001>

<bundles_post_ra>
// kernel: smallnet_forward.1
= control target key start
LH: loop header
LB: loop body
LE: loop exit
PB: predicated region body
PF: predicated region fallthrough
CT: control target
= control target key end

     0   :  { %v265_v0 = vmov 0.0   ;;  %vm22_vm0 = vcmask 64512   ;;  %vm266_vm1 = vmmov 0   ;;  %v267_v8 = vmov 0   ;;  %s350_s0 = inlined_call_operand.vmem [shape: f32[8,128], index: 0, kind: input, shape index: {}]   ;;  %s351_s1 = inlined_call_operand.vmem [shape: f32[56,8], index: 1, kind: input, shape index: {}]   ;;  %s352_s2 = inlined_call_operand.vmem [shape: f32[56,1], index: 2, kind: input, shape index: {}]   ;;  %s353_s3 = inlined_call_operand.vmem [shape: f32[1,128], index: 3, kind: output, shape index: {}]  }
   0x1   :  { %233 = vmatprep.subr.mxu0 %v265_v0  ;;  %256 = vmatprep.subr.mxu1 %v265_v0  ;;  %v14_v1 = vld [vmem:[%s350_s0] sm:$0xff]  ;;  %v153_v5 = vld [vmem:[%s352_s2 + $0x10] sm:$0xff]  ;;  %v16_v6 = vld [vmem:[%s351_s1 + $0x8] sm:$0xff] }
   0x2   :  { %v15_v2 = vld [vmem:[%s351_s1] sm:$0xff]  ;;  %234 = vmatpush3.msra.mxu0 %v14_v1  ;;  %257 = vmatpush3.msra.mxu1 %v14_v1  ;;  %v20_v7 = vld [vmem:[%s351_s1 + $0x28] sm:$0xff]  ;;  %v154_v10 = vld [vmem:[%s352_s2 + $0x18] sm:$0xff] }
   0x3   :  { %v19_v3 = vld [vmem:[%s351_s1 + $0x20] sm:$0xff]  ;;  %235 = vmatprep.mubr.msk.f32.mxu0 %vm266_vm1, %v265_v0  ;;  %247 = vmatprep.mubr.msk.f32.mxu1 %vm266_vm1, %v265_v0  ;;  %v152_v9 = vld [vmem:[%s352_s2 + $0x8] sm:$0xff]  ;;  %v17_v11 = vld [vmem:[%s351_s1 + $0x10] sm:$0xff] }
   0x4   :  { %236 = vmatmul.mubr.msk.f32.vlgmr.msra.gmra.mrb[0].mxu0 %vm22_vm0, %v15_v2  ;;  %248 = vmatmul.mubr.msk.f32.vlgmr.msra.gmra.mrb[0].mxu1 %vm22_vm0, %v19_v3  ;;  %v151_v4 = vld [vmem:[%s352_s2] sm:$0xff]  ;;  %v21_v12 = vld [vmem:[%s351_s1 + $0x30] sm:$0xff]  ;;  %v156_v14 = vld [vmem:[%s352_s2 + $0x28] sm:$0xff] }
   0x5   :  { %238 = vmatprep.mubr.msk.f32.mxu0 %vm266_vm1, %v265_v0  ;;  %250 = vmatprep.mubr.msk.f32.mxu1 %vm266_vm1, %v265_v0  ;;  %v155_v13 = vld [vmem:[%s352_s2 + $0x20] sm:$0xff]  ;;  %v18_v15 = vld [vmem:[%s351_s1 + $0x18] sm:$0xff]  ;;  %v157_v16 = vld [vmem:[%s352_s2 + $0x30] sm:$0xff] }
   0x6   :  { %261 = vset.pattern.permute.xlu0 %v267_v8  ;;  %262 = vset.pattern.permute.xlu1 %v267_v8 }
   0x7   :  { %160 = vperm.xlu0 %261, %v151_v4   ;;  %170 = vperm.xlu1 %262, %v153_v5  }
   0x8   :  { %239 = vmatmul.mubr.msk.f32.gmra.mrb[2].mxu0 %vm22_vm0, %v16_v6  ;;  %251 = vmatmul.mubr.msk.f32.gmra.mrb[2].mxu1 %vm22_vm0, %v20_v7 }
   0x9   :  { %241 = vmatprep.mubr.msk.f32.mxu0 %vm266_vm1, %v265_v0  ;;  %253 = vmatprep.mubr.msk.f32.mxu1 %vm266_vm1, %v265_v0 }
   0xb   :  { %165 = vperm.xlu0 %261, %v152_v9   ;;  %175 = vperm.xlu1 %262, %v154_v10  }
   0xc   :  { %242 = vmatmul.mubr.msk.f32.gmra.mrb[4].mxu0 %vm22_vm0, %v17_v11  ;;  %254 = vmatmul.mubr.msk.f32.gmra.mrb[4].mxu1 %vm22_vm0, %v21_v12 }
   0xd   :  { %244 = vmatprep.mubr.msk.f32.mxu0 %vm266_vm1, %v265_v0 }
   0xf   :  { %180 = vperm.xlu0 %261, %v155_v13   ;;  %185 = vperm.xlu1 %262, %v156_v14  }
  0x10   :  { %245 = vmatmul.mubr.msk.f32.gmra.mrb[6].mxu0 %vm22_vm0, %v18_v15 }
  0x13   :  { %190 = vperm.xlu0 %261, %v157_v16  }
  0x86   :  { %v161_v17 = vpop.permute.xlu0 %160  ;;  %v171_v23 = vpop.permute.xlu1 %170 }
  0x8a   :  { %v166_v29 = vpop.permute.xlu0 %165  ;;  %v176_v38 = vpop.permute.xlu1 %175 }
  0x8e   :  { %v181_v45 = vpop.permute.xlu0 %180  ;;  %v186_v48 = vpop.permute.xlu1 %185 }
  0x92   :  { %v191_v54 = vpop.permute.xlu0 %190 }
  0xd7   :  { %v110_v18 = vpop.f32.mrb[0].mxu0  ;;  %v130_v19 = vpop.f32.mrb[0].mxu1 }
  0xd8   :  { %v237_v20 = vpop.f32.mrb[1].mxu0  ;;  %v249_v21 = vpop.f32.mrb[1].mxu1  ;;  %v144_v22 = vmax.f32 %v110_v18, 0.0  ;;  %v148_v41 = vmax.f32 %v130_v19, 0.0 }
  0xda   :  { %v193_v30 = vmul.f32 %v161_v17, %v144_v22  ;;  %v197_v49 = vmul.f32 %v181_v45, %v148_v41 }
  0xdb   :  { %v115_v24 = vpop.f32.mrb[2].mxu0  ;;  %v135_v25 = vpop.f32.mrb[2].mxu1 }
  0xdc   :  { %v145_v26 = vmax.f32 %v115_v24, 0.0  ;;  %v240_v27 = vpop.f32.mrb[3].mxu0  ;;  %v252_v28 = vpop.f32.mrb[3].mxu1  ;;  %v149_v46 = vmax.f32 %v135_v25, 0.0 }
  0xde   :  { %v194_v31 = vmul.f32 %v166_v29, %v145_v26  ;;  %v198_v52 = vmul.f32 %v186_v48, %v149_v46 }
  0xdf   :  { %v120_v32 = vpop.f32.mrb[4].mxu0  ;;  %v140_v33 = vpop.f32.mrb[4].mxu1 }
  0xe0   :  { %v200_v34 = vadd.f32 %v194_v31, %v193_v30  ;;  %v146_v35 = vmax.f32 %v120_v32, 0.0  ;;  %v243_v36 = vpop.f32.mrb[5].mxu0  ;;  %v255_v37 = vpop.f32.mrb[5].mxu1  ;;  %v150_v50 = vmax.f32 %v140_v33, 0.0 }
  0xe2   :  { %v195_v39 = vmul.f32 %v171_v23, %v146_v35  ;;  %v199_v55 = vmul.f32 %v191_v54, %v150_v50 }
  0xe3   :  { %v125_v40 = vpop.f32.mrb[6].mxu0 }
  0xe4   :  { %v201_v42 = vadd.f32 %v200_v34, %v195_v39  ;;  %v147_v43 = vmax.f32 %v125_v40, 0.0  ;;  %v246_v44 = vpop.f32.mrb[7].mxu0 }
  0xe6   :  { %v196_v47 = vmul.f32 %v176_v38, %v147_v43 }
  0xe8   :  { %v202_v51 = vadd.f32 %v201_v42, %v196_v47 }
  0xea   :  { %v203_v53 = vadd.f32 %v202_v51, %v197_v49 }
  0xec   :  { %v204_v56 = vadd.f32 %v203_v53, %v198_v52 }
  0xee   :  { %v205_v57 = vadd.f32 %v204_v56, %v199_v55 }
  0xf0   :  { %v206_v58 = vrot.slane %v205_v57, 4 }
  0xf2   :  { %v207_v59 = vadd.f32 %v206_v58, %v205_v57 }
  0xf4   :  { %v208_v60 = vrot.slane %v207_v59, 2 }
  0xf6   :  { %v209_v61 = vadd.f32 %v208_v60, %v207_v59 }
  0xf8   :  { %v210_v62 = vrot.slane %v209_v61, 1 }
  0xfa   :  { %v211_v63 = vadd.f32 %v210_v62, %v209_v61 }
  0xfc   :  { %263 = vtanh.f32 %v211_v63 }
 0x106   :  { %v264_v0 = vpop.eup %263 }
 0x107   :  { %213 = vst [vmem:[%s353_s3] sm:$0x1] %v264_v0 }

</bundles_post_ra>
